<compile_context>
chip_gen: v5e
topology: v5e:2x2
jax: 0.10.0
libtpu: 0.0.40
codegen_flags: <defaults>
</compile_context>

<pallas_src>
import functools

import jax
import jax.numpy as jnp
from jax import lax
from jax.experimental import pallas as pl
from jax.experimental.pallas import tpu as pltpu

_BCE_EPS = 1e-7
_DICE_SMOOTH = 1e-6
_LANE = 128
# Per-input VMEM block target (Pallas double-buffers each input): 2 inputs x 2 bufs x 2 MiB
# = 8 MiB, comfortably inside the default scoped VMEM on v5e/v6e/v7x.
_TARGET_BLOCK_BYTES = 2 * 1024 * 1024


def _choose_spatial_tile(S, C):
    """Pick a spatial tile size (in lanes, multiple of 128) and the padded spatial extent."""
    s_lanes = pl.cdiv(S, _LANE) * _LANE
    budget_lanes = max(_TARGET_BLOCK_BYTES // (C * 4), 1024)
    budget_lanes = max((budget_lanes // 1024) * 1024, 1024)  # rows per tile % 8 == 0
    if s_lanes <= budget_lanes:
        return s_lanes, s_lanes          # single tile covers the whole (padded) spatial axis
    ts = budget_lanes
    s_pad = pl.cdiv(S, ts) * ts
    return ts, s_pad


def _dice_kernel(s_logit_ref, s_label_ref, dice_ref, num_acc, den_acc,
                 *, n_tiles, rows, valid_spatial, tile_lanes, need_mask):
    t = pl.program_id(1)

    @pl.when(t == 0)
    def _init():
        num_acc[...] = jnp.zeros_like(num_acc)
        den_acc[...] = jnp.zeros_like(den_acc)

    logits = s_logit_ref[0].astype(jnp.float32)    # (C, R, 128)
    labels = s_label_ref[0].astype(jnp.float32)    # (C, R, 128)

    # Channel softmax == F.softmax(s_logit, dim=1).  Channel is the leading axis, so the
    # max/sum over it are plain full-width elementwise ops across C (R, 128) slabs.
    m = jnp.max(logits, axis=0, keepdims=True)
    e = jnp.exp(logits - m)
    probs = e / jnp.sum(e, axis=0, keepdims=True)  # (C, R, 128)

    den_terms = labels + probs * probs
    if need_mask:
        # Mask out zero-padded spatial tail (labels are zero-padded already; probs^2 is not).
        base = t * tile_lanes
        row = lax.broadcasted_iota(jnp.int32, (rows, _LANE), 0)
        lane = lax.broadcasted_iota(jnp.int32, (rows, _LANE), 1)
        valid = (base + row * _LANE + lane) < valid_spatial
        den_terms = den_terms * valid.astype(jnp.float32)[None, :, :]

    # Accumulate per-channel 128-lane partials; the lane reduce happens once per batch elem.
    num_acc[...] += jnp.sum(labels * probs, axis=1)   # (C, 128)
    den_acc[...] += jnp.sum(den_terms, axis=1)        # (C, 128)

    @pl.when(t == n_tiles - 1)
    def _finish_batch_element():
        num = 2.0 * jnp.sum(num_acc[...], axis=1, keepdims=True)             # (C, 1)
        den = jnp.sum(den_acc[...], axis=1, keepdims=True) + _DICE_SMOOTH    # (C, 1)
        ratio_sum = jnp.sum(num / den, axis=0, keepdims=True)                # (1, 1)
        dice_ref[...] = (jnp.zeros(dice_ref.shape, dice_ref.dtype)
                         + ratio_sum.reshape(1, 1, 1))


def _finalize_kernel(dice_ref, c_logit_ref, c_label_ref,
                     total_ref, closs_ref, sloss_ref,
                     *, batch, seg_classes, if_closs):
    # ---- segmentation: 1 - mean over (B, C) of per-class dice ratios ----
    partials = dice_ref[...]                                # (B, 8, 128); per-b broadcast scalar
    ratio_total = jnp.sum(partials, axis=0)[:1, :1]         # (1, 1)
    s_loss = 1.0 - ratio_total / float(batch * seg_classes)

    # ---- MultiLabelLoss (alpha=None): sum over classes of per-class batch-mean BCE ----
    p = c_logit_ref[...].astype(jnp.float32)                # (B, NC)
    tgt = c_label_ref[...].astype(jnp.float32)
    pc = jnp.clip(p, _BCE_EPS, 1.0 - _BCE_EPS)
    bce = -(tgt * jnp.log(pc) + (1.0 - tgt) * jnp.log(1.0 - pc))
    c_loss = jnp.sum(bce, axis=(0, 1), keepdims=True) / float(batch)   # (1, 1)

    sloss_ref[...] = s_loss
    closs_ref[...] = c_loss
    total_ref[...] = s_loss + if_closs * c_loss


def combined_loss(s_logit, c_logit, s_label, c_label, if_closs=1.0):
    B, C, H, W = s_logit.shape
    NC = c_logit.shape[1]
    S = H * W

    tile_lanes, s_pad = _choose_spatial_tile(S, C)
    n_tiles = s_pad // tile_lanes
    rows_total = s_pad // _LANE
    rows_block = tile_lanes // _LANE

    s_logit_f = s_logit.reshape(B, C, S)
    s_label_f = s_label.reshape(B, C, S)
    if s_pad != S:
        pad = ((0, 0), (0, 0), (0, s_pad - S))
        s_logit_f = jnp.pad(s_logit_f, pad)
        s_label_f = jnp.pad(s_label_f, pad)
    # Lane-dense layout: spatial elements fill sublanes + lanes even when C < 8.
    s_logit_f = s_logit_f.reshape(B, C, rows_total, _LANE)
    s_label_f = s_label_f.reshape(B, C, rows_total, _LANE)

    dice_kernel = functools.partial(
        _dice_kernel, n_tiles=n_tiles, rows=rows_block, valid_spatial=S,
        tile_lanes=tile_lanes, need_mask=(s_pad != S))

    dice_partials = pl.pallas_call(
        dice_kernel,
        out_shape=jax.ShapeDtypeStruct((B, 8, _LANE), jnp.float32),
        grid_spec=pltpu.PrefetchScalarGridSpec(
            num_scalar_prefetch=0,
            grid=(B, n_tiles),
            in_specs=[
                pl.BlockSpec((1, C, rows_block, _LANE), lambda b, t: (b, 0, t, 0)),
                pl.BlockSpec((1, C, rows_block, _LANE), lambda b, t: (b, 0, t, 0)),
            ],
            out_specs=pl.BlockSpec((1, 8, _LANE), lambda b, t: (b, 0, 0)),
            scratch_shapes=[pltpu.VMEM((C, _LANE), jnp.float32),
                            pltpu.VMEM((C, _LANE), jnp.float32)],
        ),
        compiler_params=pltpu.CompilerParams(
            dimension_semantics=("parallel", "arbitrary"),
            vmem_limit_bytes=32 * 1024 * 1024),
    )(s_logit_f, s_label_f)

    fin_kernel = functools.partial(
        _finalize_kernel, batch=B, seg_classes=C, if_closs=float(if_closs))

    total, closs, sloss = pl.pallas_call(
        fin_kernel,
        out_shape=(jax.ShapeDtypeStruct((1, 1), jnp.float32),
                   jax.ShapeDtypeStruct((1, 1), jnp.float32),
                   jax.ShapeDtypeStruct((1, 1), jnp.float32)),
        grid_spec=pltpu.PrefetchScalarGridSpec(
            num_scalar_prefetch=0,
            grid=(1,),
            in_specs=[
                pl.BlockSpec((B, 8, _LANE), lambda i: (0, 0, 0)),
                pl.BlockSpec((B, NC), lambda i: (0, 0)),
                pl.BlockSpec((B, NC), lambda i: (0, 0)),
            ],
            out_specs=[pl.BlockSpec((1, 1), lambda i: (0, 0)),
                       pl.BlockSpec((1, 1), lambda i: (0, 0)),
                       pl.BlockSpec((1, 1), lambda i: (0, 0))],
        ),
        compiler_params=pltpu.CompilerParams(dimension_semantics=("arbitrary",)),
    )(dice_partials, c_logit, c_label)

    # c_p == c_logit for the alpha=None (MultiLabelLoss) path: return directly, no kernel
    # pass-through (saves one HBM read + write of (B, NC)).
    return total[0, 0], closs[0, 0], sloss[0, 0], c_logit


def _reference(s_logit, c_logit, s_label, c_label, if_closs=1.0):
    B, C, H, W = s_logit.shape
    probs = jax.nn.softmax(s_logit.astype(jnp.float32), axis=1).reshape(B, C, -1)
    labels = s_label.astype(jnp.float32).reshape(B, C, -1)
    num = 2.0 * jnp.sum(labels * probs, axis=2)
    den = jnp.sum(labels + probs ** 2, axis=2) + _DICE_SMOOTH
    s_loss = 1.0 - jnp.mean(num / den)
    pc = jnp.clip(c_logit.astype(jnp.float32), _BCE_EPS, 1.0 - _BCE_EPS)
    t = c_label.astype(jnp.float32)
    bce = -(t * jnp.log(pc) + (1.0 - t) * jnp.log(1.0 - pc))
    c_loss = jnp.sum(jnp.mean(bce, axis=0))
    return s_loss + if_closs * c_loss, c_loss, s_loss, c_logit


if __name__ == "__main__":
    B, C, H, W = 2, 4, 16, 16
    NC = C

    key = jax.random.PRNGKey(0)
    k1, k2, k3, k4 = jax.random.split(key, 4)

    s_logit = jax.random.normal(k1, (B, C, H, W), dtype=jnp.float32)
    # one-hot segmentation labels, NCHW
    lab_idx = jax.random.randint(k2, (B, H, W), 0, C)
    s_label = jnp.transpose(jax.nn.one_hot(lab_idx, C, dtype=jnp.float32), (0, 3, 1, 2))
    # classification probs (already sigmoid-ed, as MultiLabelLoss expects) + labels
    c_logit = jax.nn.sigmoid(jax.random.normal(k3, (B, NC), dtype=jnp.float32))
    c_label = (jax.random.uniform(k4, (B, NC)) > 0.5).astype(jnp.float32)

    total, c_loss, s_loss, c_p = combined_loss(s_logit, c_logit, s_label, c_label)
    jax.block_until_ready((total, c_loss, s_loss, c_p))

    rt, rc, rs, rp = _reference(s_logit, c_logit, s_label, c_label)
    assert jnp.allclose(total, rt, atol=1e-4, rtol=1e-4)
    assert jnp.allclose(c_loss, rc, atol=1e-4, rtol=1e-4)
    assert jnp.allclose(s_loss, rs, atol=1e-4, rtol=1e-4)
    assert jnp.allclose(c_p, rp, atol=1e-6, rtol=1e-6)

    print("KERNEL_OK")
</pallas_src>

<mosaic_0001>
module attributes {stable_mosaic.version = 11 : i64} {
  func.func @_dice_kernel(%arg0: i32, %arg1: i32, %arg2: memref<1x4x2x128xf32, #tpu.memory_space<vmem>>, %arg3: memref<1x4x2x128xf32, #tpu.memory_space<vmem>>, %arg4: memref<1x8x128xf32, #tpu.memory_space<vmem>>, %arg5: memref<4x128xf32, #tpu.memory_space<vmem>>, %arg6: memref<4x128xf32, #tpu.memory_space<vmem>>) attributes {dimension_semantics = [#tpu.dimension_semantics<parallel>, #tpu.dimension_semantics<arbitrary>], iteration_bounds = array<i64: 2, 1>, scalar_prefetch = 0 : i64, scratch_operands = 2 : i64, tpu.core_type = #tpu.core_type<tc>, window_params = [{transform_indices = @transform_0, window_bounds = array<i64: 1, 4, 2, 128>}, {transform_indices = @transform_1, window_bounds = array<i64: 1, 4, 2, 128>}, {transform_indices = @transform_2, window_bounds = array<i64: 1, 8, 128>}]} {
    %c0_i32 = arith.constant 0 : i32
    %0 = arith.cmpi eq, %arg1, %c0_i32 : i32
    %1 = arith.extui %0 : i1 to i32
    %c0_i32_0 = arith.constant 0 : i32
    %2 = arith.cmpi ne, %1, %c0_i32_0 : i32
    scf.if %2 {
      %cst_21 = arith.constant 0.000000e+00 : f32
      %30 = vector.broadcast %cst_21 : f32 to vector<4x128xf32>
      %c0_22 = arith.constant 0 : index
      %c0_23 = arith.constant 0 : index
      %31 = vector.load %arg5[%c0_22, %c0_23] : memref<4x128xf32, #tpu.memory_space<vmem>>, vector<4x128xf32>
      tpu.vector_store %arg5[%c0_22, %c0_23], %30 {strides = array<i32>} : memref<4x128xf32, #tpu.memory_space<vmem>>, vector<4x128xf32>,
      %cst_24 = arith.constant 0.000000e+00 : f32
      %32 = vector.broadcast %cst_24 : f32 to vector<4x128xf32>
      %c0_25 = arith.constant 0 : index
      %c0_26 = arith.constant 0 : index
      %33 = vector.load %arg6[%c0_25, %c0_26] : memref<4x128xf32, #tpu.memory_space<vmem>>, vector<4x128xf32>
      tpu.vector_store %arg6[%c0_25, %c0_26], %32 {strides = array<i32>} : memref<4x128xf32, #tpu.memory_space<vmem>>, vector<4x128xf32>,
    } else {
    }
    %c0 = arith.constant 0 : index
    %c0_1 = arith.constant 0 : index
    %c0_2 = arith.constant 0 : index
    %c0_3 = arith.constant 0 : index
    %3 = vector.load %arg2[%c0, %c0_1, %c0_2, %c0_3] : memref<1x4x2x128xf32, #tpu.memory_space<vmem>>, vector<1x4x2x128xf32>
    %4 = vector.shape_cast %3 : vector<1x4x2x128xf32> to vector<4x2x128xf32>
    %c0_4 = arith.constant 0 : index
    %c0_5 = arith.constant 0 : index
    %c0_6 = arith.constant 0 : index
    %c0_7 = arith.constant 0 : index
    %5 = vector.load %arg3[%c0_4, %c0_5, %c0_6, %c0_7] : memref<1x4x2x128xf32, #tpu.memory_space<vmem>>, vector<1x4x2x128xf32>
    %6 = vector.shape_cast %5 : vector<1x4x2x128xf32> to vector<4x2x128xf32>
    %cst = arith.constant dense<0xFF800000> : vector<2x128xf32>
    %7 = vector.multi_reduction <maximumf>, %4, %cst [0] : vector<4x2x128xf32> to vector<2x128xf32>
    %8 = vector.shape_cast %7 : vector<2x128xf32> to vector<1x2x128xf32>
    %9 = vector.broadcast %8 : vector<1x2x128xf32> to vector<4x2x128xf32>
    %10 = arith.subf %4, %9 : vector<4x2x128xf32>
    %11 = math.exp %10 : vector<4x2x128xf32>
    %cst_8 = arith.constant dense<0.000000e+00> : vector<2x128xf32>
    %12 = vector.multi_reduction <add>, %11, %cst_8 [0] : vector<4x2x128xf32> to vector<2x128xf32>
    %13 = vector.shape_cast %12 : vector<2x128xf32> to vector<1x2x128xf32>
    %14 = vector.broadcast %13 : vector<1x2x128xf32> to vector<4x2x128xf32>
    %15 = arith.divf %11, %14 : vector<4x2x128xf32>
    %16 = arith.mulf %15, %15 : vector<4x2x128xf32>
    %17 = arith.addf %6, %16 : vector<4x2x128xf32>
    %c0_9 = arith.constant 0 : index
    %c0_10 = arith.constant 0 : index
    %18 = vector.load %arg5[%c0_9, %c0_10] : memref<4x128xf32, #tpu.memory_space<vmem>>, vector<4x128xf32>
    %19 = arith.mulf %6, %15 : vector<4x2x128xf32>
    %cst_11 = arith.constant dense<0.000000e+00> : vector<4x128xf32>
    %20 = vector.multi_reduction <add>, %19, %cst_11 [1] : vector<4x2x128xf32> to vector<4x128xf32>
    %21 = arith.addf %18, %20 : vector<4x128xf32>
    %c0_12 = arith.constant 0 : index
    %c0_13 = arith.constant 0 : index
    %22 = vector.load %arg5[%c0_12, %c0_13] : memref<4x128xf32, #tpu.memory_space<vmem>>, vector<4x128xf32>
    tpu.vector_store %arg5[%c0_12, %c0_13], %21 {strides = array<i32>} : memref<4x128xf32, #tpu.memory_space<vmem>>, vector<4x128xf32>,
    %c0_14 = arith.constant 0 : index
    %c0_15 = arith.constant 0 : index
    %23 = vector.load %arg6[%c0_14, %c0_15] : memref<4x128xf32, #tpu.memory_space<vmem>>, vector<4x128xf32>
    %cst_16 = arith.constant dense<0.000000e+00> : vector<4x128xf32>
    %24 = vector.multi_reduction <add>, %17, %cst_16 [1] : vector<4x2x128xf32> to vector<4x128xf32>
    %25 = arith.addf %23, %24 : vector<4x128xf32>
    %c0_17 = arith.constant 0 : index
    %c0_18 = arith.constant 0 : index
    %26 = vector.load %arg6[%c0_17, %c0_18] : memref<4x128xf32, #tpu.memory_space<vmem>>, vector<4x128xf32>
    tpu.vector_store %arg6[%c0_17, %c0_18], %25 {strides = array<i32>} : memref<4x128xf32, #tpu.memory_space<vmem>>, vector<4x128xf32>,
    %c0_i32_19 = arith.constant 0 : i32
    %27 = arith.cmpi eq, %arg1, %c0_i32_19 : i32
    %28 = arith.extui %27 : i1 to i32
    %c0_i32_20 = arith.constant 0 : i32
    %29 = arith.cmpi ne, %28, %c0_i32_20 : i32
    scf.if %29 {
      %c0_21 = arith.constant 0 : index
      %c0_22 = arith.constant 0 : index
      %30 = vector.load %arg5[%c0_21, %c0_22] : memref<4x128xf32, #tpu.memory_space<vmem>>, vector<4x128xf32>
      %cst_23 = arith.constant dense<0.000000e+00> : vector<4xf32>
      %31 = vector.multi_reduction <add>, %30, %cst_23 [1] : vector<4x128xf32> to vector<4xf32>
      %32 = vector.shape_cast %31 : vector<4xf32> to vector<4x1xf32>
      %cst_24 = arith.constant 2.000000e+00 : f32
      %33 = vector.broadcast %cst_24 : f32 to vector<4x1xf32>
      %34 = arith.mulf %33, %32 : vector<4x1xf32>
      %c0_25 = arith.constant 0 : index
      %c0_26 = arith.constant 0 : index
      %35 = vector.load %arg6[%c0_25, %c0_26] : memref<4x128xf32, #tpu.memory_space<vmem>>, vector<4x128xf32>
      %cst_27 = arith.constant dense<0.000000e+00> : vector<4xf32>
      %36 = vector.multi_reduction <add>, %35, %cst_27 [1] : vector<4x128xf32> to vector<4xf32>
      %37 = vector.shape_cast %36 : vector<4xf32> to vector<4x1xf32>
      %cst_28 = arith.constant 9.99999997E-7 : f32
      %38 = vector.broadcast %cst_28 : f32 to vector<4x1xf32>
      %39 = arith.addf %37, %38 : vector<4x1xf32>
      %40 = arith.divf %34, %39 : vector<4x1xf32>
      %cst_29 = arith.constant dense<0.000000e+00> : vector<1xf32>
      %41 = vector.multi_reduction <add>, %40, %cst_29 [0] : vector<4x1xf32> to vector<1xf32>
      %42 = vector.shape_cast %41 : vector<1xf32> to vector<1x1xf32>
      %cst_30 = arith.constant 0.000000e+00 : f32
      %43 = vector.broadcast %cst_30 : f32 to vector<1x8x128xf32>
      %44 = vector.shape_cast %42 : vector<1x1xf32> to vector<1x1x1xf32>
      %45 = vector.broadcast %44 : vector<1x1x1xf32> to vector<1x8x128xf32>
      %46 = arith.addf %43, %45 : vector<1x8x128xf32>
      %c0_31 = arith.constant 0 : index
      %c0_32 = arith.constant 0 : index
      %c0_33 = arith.constant 0 : index
      %47 = vector.load %arg4[%c0_31, %c0_32, %c0_33] : memref<1x8x128xf32, #tpu.memory_space<vmem>>, vector<1x8x128xf32>
      tpu.vector_store %arg4[%c0_31, %c0_32, %c0_33], %46 {strides = array<i32>} : memref<1x8x128xf32, #tpu.memory_space<vmem>>, vector<1x8x128xf32>,
    } else {
    }
    return
  }
  func.func @transform_0(%arg0: i32, %arg1: i32) -> (i32, i32, i32, i32) {
    %c0_i32 = arith.constant 0 : i32
    %c0_i32_0 = arith.constant 0 : i32
    %c0_i32_1 = arith.constant 0 : i32
    return %arg0, %c0_i32, %arg1, %c0_i32_0 : i32, i32, i32, i32
  }
  func.func @transform_1(%arg0: i32, %arg1: i32) -> (i32, i32, i32, i32) {
    %c0_i32 = arith.constant 0 : i32
    %c0_i32_0 = arith.constant 0 : i32
    %c0_i32_1 = arith.constant 0 : i32
    return %arg0, %c0_i32, %arg1, %c0_i32_0 : i32, i32, i32, i32
  }
  func.func @transform_2(%arg0: i32, %arg1: i32) -> (i32, i32, i32) {
    %c0_i32 = arith.constant 0 : i32
    %c0_i32_0 = arith.constant 0 : i32
    %c0_i32_1 = arith.constant 0 : i32
    return %arg0, %c0_i32, %c0_i32_0 : i32, i32, i32
  }
}

</mosaic_0001>

<bundles_post_ra>
// kernel: tpu_custom_call.1
= control target key start
LH: loop header
LB: loop body
LE: loop exit
PB: predicated region body
PF: predicated region fallthrough
CT: control target
= control target key end

     0   :  { %7 = vsyncpa [#allocation5], 0  ;;  %s980_s0 = inlined_call_operand.hbm [shape: f32[2,4,2,128], index: 0, kind: input, shape index: {}]   ;;  %s981_s1 = inlined_call_operand.hbm [shape: f32[2,4,2,128], index: 1, kind: input, shape index: {}]   ;;  %s982_s2 = inlined_call_operand.hbm [shape: f32[2,8,128], index: 2, kind: output, shape index: {}]  }
   0x1   :  { %9 = vsyncpa [#allocation5 + $0x1], 0 }
   0x2   :  { %10 = vsyncpa [#allocation8], 0 }
   0x3   :  { %12 = vsyncpa [#allocation8 + $0x1], 0 }
   0x4   :  { %13 = vsyncpa [#allocation6], 0 }
   0x5   :  { %15 = vsyncpa [#allocation6 + $0x1], 0  ;;  %s803_s9 = smov 0   ;;  %s805_s10 = smov 0  }
   0x6   :  { %s807_s11 = smov 0   ;;  %s809_s12 = smov 0  }
   0x7   :  { %s811_s13 = smov 0   ;;  %s813_s14 = smov 0  }
   0x8 LB: > { %s535_s15 = sadd.s32 4294967295, %s783_s14   ;;  %s536_s16 = sadd.s32 4294967294, %s783_s14   ;;  %s783_s14 = sphi %s813_s14, %s21_s14   ;;  %s779_s13 = sphi %s811_s13, %s992_s13   ;;  %s775_s12 = sphi %s809_s12, %s991_s12   ;;  %s771_s11 = sphi %s807_s11, %s990_s11   ;;  %s767_s10 = sphi %s805_s10, %s989_s10   ;;  %s763_s9 = sphi %s803_s9, %s988_s9  }
   0x9   : > { %s33_s17 = sadd.s32 1, %s779_s13  ;;  %s42_s18 = sadd.s32 1, %s771_s11 }
   0xa   : > { %p35_p0 = scmp.ge.s32.totalorder %s33_s17, 2  ;;  %p49_p1 = scmp.ne.s32.totalorder %s771_s11, %s767_s10 }
   0xb   : > { %p50_p2 = scmp.eq.s32.totalorder %s783_s14, 0  ;;  %p55_p3 = scmp.ne.s32.totalorder %s767_s10, %s763_s9 }
   0xc   : > { %s994_s17 = smov (%p35_p0, %s33_s17), 0  ;;  %p56_p5 = scmp.eq.s32.totalorder %s535_s15, 0 }
   0xd   : > { %p844_p4 = por %p50_p2, %p49_p1  ;;  %s37_s20 = ssub.s32 %s779_s13, %s994_s17 }
   0xe   : > { %p107_p6 = scmp.eq.s32.totalorder %s535_s15, 1  ;;  %p40_p7 = scmp.eq.s32.totalorder %s37_s20, 0 }
   0xf   : > { %p850_p8 = por %p56_p5, %p55_p3  ;;  %p113_p10 = scmp.eq.s32.totalorder %s536_s16, 1 }
  0x10   : > { %p854_p9 = por %p107_p6, %p49_p1  ;;  %p538_p12 = scmp.ge.s32.totalorder %s783_s14, 2 }
  0x11   : > { %s859_s23 = scalar_select %p40_p7, %s771_s11, %s42_s18  }
  0x12   : > { %p861_p11 = por %p113_p10, %p55_p3  ;;  %p572_p13 = scmp.lt.s32.totalorder %s783_s14, 2 }
  0x13   : > { %s868_s25 = sand.u32 1, %s771_s11   ;;  %s553_s27 = sshll.u32 %s779_s13, 3 }
  0x14   : > { %s539_s26 = sshll.u32 %s868_s25, 3  ;;  %s143_s30 = scalar_lea.hbm %s980_s0, %s553_s27 }
  0x15   : > { %s137_s3 = scalar_lea.vmem [#allocation4], %s539_s26  ;;  %s144_s5 = sshll.u32 %s143_s30, 4  ;;  %s145_s5 = int_to_ptr.hbm [resolvable:$true] %s144_s5 }
  0x16   : > { %s146_s4 = sshll.u32 %s137_s3, 4  ;;  %p877_p0 = pnand %p572_p13, %p844_p4  ;;  %s147_s4 = int_to_ptr.vmem [resolvable:$true] %s146_s4 }
  0x17   : > { %p545_p1 = scmp.ge.s32.totalorder %s783_s14, 1  ;;  %s134_s7 = scalar_lea.sflag [#allocation5], %s868_s25 }
  0x18   : > { %s785_s8 = smov 32   ;;  %s786_s15 = smov 2  }
  0x19   : > { %564 = dma.hbm_to_vmem [thread:$0]  (!%p877_p0), %s145_s5, 128, %s147_s4, %s134_s7, %s785_s8, %s785_s8, %s786_s15  }
  0x1a   : > { %p177_p2 = scmp.lt.s32.totalorder %s783_s14, 3  ;;  %s166_s20 = scalar_lea.hbm %s981_s1, %s553_s27 }
  0x1b   : > { %s167_s28 = sshll.u32 %s166_s20, 4  ;;  %s160_s19 = scalar_lea.vmem [#allocation7], %s539_s26  ;;  %s168_s28 = int_to_ptr.hbm [resolvable:$true] %s167_s28 }
  0x1c   : > { %p178_p3 = pnand %p545_p1, %p177_p2  ;;  %s169_s29 = sshll.u32 %s160_s19, 4  ;;  %s170_s29 = int_to_ptr.vmem [resolvable:$true] %s169_s29 }
  0x1d   : > { %s157_s30 = scalar_lea.sflag [#allocation8], %s868_s25  ;;  %s893_s3 = sand.u32 (!%p178_p3), 1, %s767_s10  }
  0x1e   : > { %567 = dma.hbm_to_vmem [thread:$0]  (!%p877_p0), %s168_s28, 128, %s170_s29, %s157_s30, %s785_s8, %s785_s8, %s786_s15  }
  0x1f   : > { %181 = sbr.rel (%p178_p3) target bundleno = 269 (0x10d), region = 28  ;;  %s896_s4 = sshll.u32 (!%p178_p3), %s893_s3, 3 }
  0x20   : > { %s184_s27 = scalar_lea.sflag (!%p178_p3), [#allocation5], %s893_s3  ;;  %s187_s5 = scalar_lea.vmem (!%p178_p3), [#allocation4], %s896_s4 }
  0x24   : > { %750 = dma.done.wait (%p850_p8), %s184_s27, 128  }
  0x25   : > { %752 = vsyncadd (%p850_p8), %s184_s27, 4294967168  ;;  %s194_s25 = scalar_lea.sflag [#allocation8], %s893_s3  ;;  %s906_s26 = scalar_lea.vmem [#allocation7], %s896_s4 }
  0x26   : > { %754 = dma.done.wait (%p850_p8), %s194_s25, 128  }
  0x27   : > { %756 = vsyncadd (%p850_p8), %s194_s25, 4294967168  ;;  %v787_v0 = vmov 0.0   ;;  %vm238_vm0 = vcmask 1041408   ;;  %v230_v1 = vld [vmem:[%s187_s5] sm:$0x3]  ;;  %vm328_vm5 = vcmask 1041409  }
  0x28   : > { %229 = vst [vmem:[#allocation3] sm:$0xf] %v787_v0  ;;  %v231_v2 = vld [vmem:[%s187_s5 + $0x2] sm:$0x3]  ;;  %v232_v3 = vld [vmem:[%s187_s5 + $0x4] sm:$0x3] }
  0x29   : > { %228 = vst [vmem:[#allocation2] sm:$0xf] %v787_v0  ;;  %v233_v4 = vld [vmem:[%s187_s5 + $0x6] sm:$0x3]  ;;  %v239_v5 = vsel %vm238_vm0, %v230_v1, -inf  ;;  %v240_v6 = vsel %vm238_vm0, %v231_v2, -inf }
  0x2a   : > { %v241_v7 = vsel %vm238_vm0, %v232_v3, -inf  ;;  %v242_v8 = vsel %vm238_vm0, %v233_v4, -inf  ;;  %v243_v9 = vmax.f32 %v239_v5, %v240_v6  ;;  %v234_v41 = vld [vmem:[%s906_s26] sm:$0x3]  ;;  %v235_v46 = vld [vmem:[%s906_s26 + $0x2] sm:$0x3] }
  0x2b   : > { %v244_v10 = vmax.f32 %v241_v7, %v242_v8  ;;  %v236_v47 = vld [vmem:[%s906_s26 + $0x4] sm:$0x3]  ;;  %v237_v48 = vld [vmem:[%s906_s26 + $0x6] sm:$0x3]  ;;  %vm330_vm6 = vcmask 1042434   ;;  %vm332_vm7 = vcmask 1043459  }
  0x2c   : > { %vm380_vm8 = vcmask 1043456   ;;  %s550_s21 = sshll.u32 %s775_s12, 3  ;;  %s223_s15 = scalar_lea.vmem [#allocation9], %s896_s4 }
  0x2d   : > { %v245_v11 = vmax.f32 %v243_v9, %v244_v10  ;;  %s425_s8 = scalar_lea.hbm %s982_s2, %s550_s21  ;;  %s427_s16 = sshll.u32 %s223_s15, 4  ;;  %s428_s16 = int_to_ptr.vmem [resolvable:$true] %s427_s16 }
  0x2e   : > { %s429_s18 = sshll.u32 %s425_s8, 4  ;;  %s415_s20 = scalar_lea.sflag [#allocation6], %s893_s3  ;;  %s430_s18 = int_to_ptr.hbm [resolvable:$true] %s429_s18 }
  0x2f   : > { %v246_v12 = vsub.f32 %v230_v1, %v245_v11  ;;  %v247_v13 = vsub.f32 %v231_v2, %v245_v11  ;;  %v248_v14 = vsub.f32 %v232_v3, %v245_v11  ;;  %v249_v15 = vsub.f32 %v233_v4, %v245_v11  ;;  %s711_s28 = sshra.s32 %s430_s18, 4  ;;  %s717_s30 = scalar_lea.hbm %s982_s2, 16  ;;  %s712_s28 = int_to_ptr.hbm [resolvable:$true] %s711_s28 }
  0x30   : > { %s713_s12 = scalar_lea.hbm %s712_s28, 8  ;;  %p718_p7 = scmp.lt.s32.totalorder %s712_s28, %s982_s2 }
  0x31   : > { %v250_v16 = vmul.f32 1.442695, %v246_v12  ;;  %v252_v17 = vmul.f32 1.442695, %v247_v13  ;;  %v254_v18 = vmul.f32 1.442695, %v248_v14  ;;  %p714_p4 = scmp.ne.s32.totalorder %s712_s28, %s713_s12  ;;  %p719_p8 = scmp.lt.s32.totalorder %s717_s30, %s713_s12 }
  0x32   : > { %v256_v19 = vmul.f32 1.442695, %v249_v15 }
  0x33   : > { %625 = vpow2.f32 %v250_v16  ;;  %p715_p5 = pnand %p714_p4, %p854_p9  ;;  %p720_p10 = por %p719_p8, %p718_p7 }
  0x34   : > { %627 = vpow2.f32 %v252_v17 }
  0x35   : > { %629 = vpow2.f32 %v254_v18  ;;  %p716_p6 = pneg %p715_p5 }
  0x36   : > { %631 = vpow2.f32 %v256_v19 }
  0x37   : > { %p721_p13 = pnand %p720_p10, %p716_p6 }
  0x39   : > { %v626_v20 = vpop.eup %625 }
  0x3a   : > { %v628_v21 = vpop.eup %627  ;;  %v258_v22 = vsel %vm238_vm0, %v626_v20, 0.0 }
  0x3b   : > { %v630_v23 = vpop.eup %629  ;;  %v259_v24 = vsel %vm238_vm0, %v628_v21, 0.0 }
  0x3c   : > { %v632_v25 = vpop.eup %631  ;;  %v260_v26 = vadd.f32 %v259_v24, %v258_v22  ;;  %v261_v27 = vsel %vm238_vm0, %v630_v23, 0.0 }
  0x3d   : > { %v263_v28 = vsel %vm238_vm0, %v632_v25, 0.0 }
  0x3e   : > { %v262_v29 = vadd.f32 %v261_v27, %v260_v26 }
  0x40   : > { %v264_v30 = vadd.f32 %v263_v28, %v262_v29 }
  0x42   : > { %633 = vrcp.f32 %v264_v30  ;;  %v276_v33 = vand.u32 2147483648, %v264_v30  ;;  %vm270_vm1 = vweird.f32 %v264_v30  ;;  %v274_v35 = vand.u32 2147483647, %v264_v30 }
  0x44   : > { %v277_v37 = vor.u32 1.1754944e-38, %v276_v33  ;;  %vm275_vm4 = vcmp.eq.f32.partialorder %v274_v35, 8.507059e+37 }
  0x48   : > { %v634_v31 = vpop.eup %633 }
  0x49   : > { %v266_v32 = vmul.f32 %v634_v31, %v264_v30  ;;  %vm271_vm2 = vweird.f32 %v634_v31 }
  0x4a   : > { %vm272_vm3 = vmor %vm270_vm1, %vm271_vm2 }
  0x4b   : > { %v267_v34 = vsub.f32 1.0, %v266_v32 }
  0x4d   : > { %v268_v36 = vmul.f32 %v634_v31, %v267_v34 }
  0x4f   : > { %v269_v38 = vadd.f32 %v634_v31, %v268_v36 }
  0x51   : > { %v273_v39 = vsel %vm272_vm3, %v634_v31, %v269_v38 }
  0x52   : > { %v278_v40 = vsel %vm275_vm4, %v277_v37, %v273_v39 }
  0x53   : > { %v279_v42 = vmul.f32 %v626_v20, %v278_v40  ;;  %v280_v43 = vmul.f32 %v628_v21, %v278_v40  ;;  %v281_v44 = vmul.f32 %v630_v23, %v278_v40  ;;  %v282_v45 = vmul.f32 %v632_v25, %v278_v40 }
  0x55   : > { %v283_v49 = vmul.f32 %v279_v42, %v279_v42  ;;  %v284_v50 = vmul.f32 %v280_v43, %v280_v43  ;;  %v285_v51 = vmul.f32 %v281_v44, %v281_v44  ;;  %v286_v52 = vmul.f32 %v282_v45, %v282_v45 }
  0x56   : > { %v292_v53 = vmul.f32 %v279_v42, %v234_v41  ;;  %v293_v54 = vmul.f32 %v280_v43, %v235_v46  ;;  %v294_v55 = vmul.f32 %v281_v44, %v236_v47  ;;  %v295_v56 = vmul.f32 %v282_v45, %v237_v48 }
  0x57   : > { %v287_v57 = vadd.f32 %v283_v49, %v234_v41  ;;  %v288_v58 = vadd.f32 %v284_v50, %v235_v46  ;;  %v289_v59 = vadd.f32 %v285_v51, %v236_v47  ;;  %v290_v60 = vadd.f32 %v286_v52, %v237_v48 }
  0x58   : > { %v296_v61 = vsel %vm238_vm0, %v292_v53, 0.0  ;;  %v303_v62 = vsel %vm238_vm0, %v293_v54, 0.0  ;;  %v310_v63 = vsel %vm238_vm0, %v294_v55, 0.0  ;;  %v317_v0 = vsel %vm238_vm0, %v295_v56, 0.0  ;;  %v337_v53 = vld [vmem:[#allocation3] sm:$0xf] }
  0x59   : > { %v338_v1 = vsel %vm238_vm0, %v287_v57, 0.0  ;;  %v345_v2 = vsel %vm238_vm0, %v288_v58, 0.0  ;;  %v352_v3 = vsel %vm238_vm0, %v289_v59, 0.0  ;;  %v359_v4 = vsel %vm238_vm0, %v290_v60, 0.0  ;;  %v291_v56 = vld [vmem:[#allocation2] sm:$0xf] }
  0x5a   : > { %v339_v5 = vrot.slane %v338_v1, 4  ;;  %v346_v6 = vrot.slane %v345_v2, 4  ;;  %v353_v7 = vrot.slane %v352_v3, 4  ;;  %v360_v8 = vrot.slane %v359_v4, 4 }
  0x5b   : > { %v297_v9 = vrot.slane %v296_v61, 4  ;;  %v304_v10 = vrot.slane %v303_v62, 4  ;;  %v311_v11 = vrot.slane %v310_v63, 4  ;;  %v318_v12 = vrot.slane %v317_v0, 4 }
  0x5c   : > { %v340_v13 = vadd.f32 %v339_v5, %v338_v1  ;;  %v347_v14 = vadd.f32 %v346_v6, %v345_v2  ;;  %v354_v15 = vadd.f32 %v353_v7, %v352_v3  ;;  %v361_v16 = vadd.f32 %v360_v8, %v359_v4 }
  0x5d   : > { %v298_v17 = vadd.f32 %v297_v9, %v296_v61  ;;  %v305_v18 = vadd.f32 %v304_v10, %v303_v62  ;;  %v312_v19 = vadd.f32 %v311_v11, %v310_v63  ;;  %v319_v20 = vadd.f32 %v318_v12, %v317_v0 }
  0x5e   : > { %v341_v21 = vrot.slane %v340_v13, 2  ;;  %v348_v22 = vrot.slane %v347_v14, 2  ;;  %v355_v23 = vrot.slane %v354_v15, 2  ;;  %v362_v24 = vrot.slane %v361_v16, 2 }
  0x5f   : > { %v299_v25 = vrot.slane %v298_v17, 2  ;;  %v306_v26 = vrot.slane %v305_v18, 2  ;;  %v313_v27 = vrot.slane %v312_v19, 2  ;;  %v320_v28 = vrot.slane %v319_v20, 2 }
  0x60   : > { %v342_v29 = vadd.f32 %v341_v21, %v340_v13  ;;  %v349_v30 = vadd.f32 %v348_v22, %v347_v14  ;;  %v356_v31 = vadd.f32 %v355_v23, %v354_v15  ;;  %v363_v32 = vadd.f32 %v362_v24, %v361_v16 }
  0x61   : > { %v300_v33 = vadd.f32 %v299_v25, %v298_v17  ;;  %v307_v34 = vadd.f32 %v306_v26, %v305_v18  ;;  %v314_v35 = vadd.f32 %v313_v27, %v312_v19  ;;  %v321_v36 = vadd.f32 %v320_v28, %v319_v20 }
  0x62   : > { %v343_v37 = vrot.slane %v342_v29, 1  ;;  %v350_v38 = vrot.slane %v349_v30, 1  ;;  %v357_v39 = vrot.slane %v356_v31, 1  ;;  %v364_v40 = vrot.slane %v363_v32, 1 }
  0x63   : > { %v301_v41 = vrot.slane %v300_v33, 1  ;;  %v308_v42 = vrot.slane %v307_v34, 1  ;;  %v315_v43 = vrot.slane %v314_v35, 1  ;;  %v322_v44 = vrot.slane %v321_v36, 1 }
  0x64   : > { %v344_v45 = vadd.f32 %v343_v37, %v342_v29  ;;  %v351_v46 = vadd.f32 %v350_v38, %v349_v30  ;;  %v358_v47 = vadd.f32 %v357_v39, %v356_v31  ;;  %v365_v48 = vadd.f32 %v364_v40, %v363_v32 }
  0x65   : > { %v302_v49 = vadd.f32 %v301_v41, %v300_v33  ;;  %v309_v50 = vadd.f32 %v308_v42, %v307_v34  ;;  %v316_v51 = vadd.f32 %v315_v43, %v314_v35  ;;  %v323_v52 = vadd.f32 %v322_v44, %v321_v36 }
  0x66   : > { %v370_v54 = vsel %vm328_vm5, %v351_v46, %v344_v45 }
  0x67   : > { %v371_v55 = vsel %vm330_vm6, %v358_v47, %v370_v54  ;;  %v329_v57 = vsel %vm328_vm5, %v309_v50, %v302_v49 }
  0x68   : > { %v372_v58 = vsel %vm332_vm7, %v365_v48, %v371_v55  ;;  %v331_v59 = vsel %vm330_vm6, %v316_v51, %v329_v57 }
  0x69   : > { %v374_v60 = vadd.f32 %v372_v58, %v337_v53  ;;  %v333_v61 = vsel %vm332_vm7, %v323_v52, %v331_v59 }
  0x6a   : > { %v335_v62 = vadd.f32 %v333_v61, %v291_v56 }
  0x6b   : > { %375 = vst [vmem:[#allocation3] sm:$0xf] %v374_v60 }
  0x6c   : > { %336 = vst [vmem:[#allocation2] sm:$0xf] %v335_v62 }
  0x72   : > { %v385_v63 = vld [vmem:[#allocation3] sm:$0xf] }
  0x73   : > { %v386_v0 = vsel %vm380_vm8, %v385_v63, 0.0  ;;  %v379_v1 = vld [vmem:[#allocation2] sm:$0xf] }
  0x74   : > { %387 = vadd.xlane.f32.xlu0 %v386_v0  ;;  %v381_v2 = vsel %vm380_vm8, %v379_v1, 0.0 }
  0x7c   : > { %382 = vadd.xlane.f32.xlu0 %v381_v2 }
  0xe7   : > { %v388_v3 = vpop.xlane.xlu0 %387 }
  0xe8   : > { %v389_v4 = vadd.f32 1e-06, %v388_v3 }
  0xea   : > { %635 = vrcp.f32 %v389_v4  ;;  %v401_v8 = vand.u32 2147483648, %v389_v4  ;;  %v399_v11 = vand.u32 2147483647, %v389_v4  ;;  %vm395_vm10 = vweird.f32 %v389_v4 }
  0xec   : > { %v402_v14 = vor.u32 1.1754944e-38, %v401_v8  ;;  %vm400_vm12 = vcmp.eq.f32.partialorder %v399_v11, 8.507059e+37 }
  0xef   : > { %v383_v9 = vpop.xlane.xlu0 %382 }
  0xf0   : > { %v636_v5 = vpop.eup %635  ;;  %v384_v13 = vmul.f32 2.0, %v383_v9 }
  0xf1   : > { %v391_v6 = vmul.f32 %v636_v5, %v389_v4  ;;  %vm396_vm9 = vweird.f32 %v636_v5 }
  0xf2   : > { %vm397_vm11 = vmor %vm395_vm10, %vm396_vm9 }
  0xf3   : > { %v392_v7 = vsub.f32 1.0, %v391_v6 }
  0xf5   : > { %v393_v10 = vmul.f32 %v636_v5, %v392_v7 }
  0xf7   : > { %v394_v12 = vadd.f32 %v636_v5, %v393_v10 }
  0xf9   : > { %v398_v15 = vsel %vm397_vm11, %v636_v5, %v394_v12 }
  0xfa   : > { %v403_v16 = vsel %vm400_vm12, %v402_v14, %v398_v15 }
  0xfb   : > { %v404_v17 = vmul.f32 %v403_v16, %v384_v13 }
  0xfd   : > { %v405_v18 = vsel %vm380_vm8, %v404_v17, 0.0 }
  0xfe   : > { %v406_v19 = vrot.slane %v405_v18, 4 }
 0x100   : > { %v407_v20 = vadd.f32 %v406_v19, %v405_v18 }
 0x102   : > { %v408_v21 = vrot.slane %v407_v20, 2 }
 0x104   : > { %v409_v22 = vadd.f32 %v408_v21, %v407_v20 }
 0x106   : > { %v410_v23 = vrot.slane %v409_v22, 1 }
 0x108   : > { %v411_v24 = vadd.f32 %v410_v23, %v409_v22 }
 0x10a   : > { %413 = vst [vmem:[%s223_s15] sm:$0xff] %v411_v24 }
 0x10b   : > { %724 = shalt.err (!%p721_p13)
}
 0x10c   : > { %559 = dma.vmem_to_hbm [thread:$0]  (%p854_p9), %s428_s16, 128, %s430_s18, %s415_s20  }
 0x10d PF: > { %s441_s3 = sand.u32 1, %s763_s9   ;;  %p569_p0 = pnand %p538_p12, %p861_p11 }
 0x10e   : > { %s442_s5 = scalar_lea.sflag [#allocation6], %s441_s3 }
 0x10f   : > { %p570_p1 = pneg %p569_p0 }
 0x111   : > { %758 = dma.done.wait (%p570_p1), %s442_s5, 128  }
 0x112   : > { %760 = vsyncadd (%p570_p1), %s442_s5, 4294967168  ;;  %s21_s14 = sadd.s32 1, %s783_s14   ;;  %s988_s9 = smov %s767_s10 }
 0x113   : > { %p18_p2 = scmp.ge.s32.totalorder %s21_s14, 4   ;;  %s989_s10 = smov %s771_s11 }
 0x114   : > { %s990_s11 = smov %s859_s23  ;;  %s991_s12 = smov %s779_s13 }
 0x115   : > { %s992_s13 = smov %s994_s17  ;;  %20 = sbr.rel (!%p18_p2) target bundleno = 8 (0x8), region = 94 }
 0x11a   :  { %448 = vsyncpa [#allocation5], 1 }
 0x11b   :  { %450 = vsyncpa [#allocation5 + $0x1], 1 }
 0x11c   :  { %451 = vsyncpa [#allocation8], 1 }
 0x11d   :  { %453 = vsyncpa [#allocation8 + $0x1], 1 }
 0x11e   :  { %454 = vsyncpa [#allocation6], 1 }
 0x11f   :  { %456 = vsyncpa [#allocation6 + $0x1], 1 }

</bundles_post_ra>
